<compile_context>
chip_gen: v7x
topology: tpu7x:2x2x1
jax: 0.10.0
libtpu: 0.0.40
codegen_flags: <defaults>
</compile_context>

<pallas_src>
import functools

import jax
import jax.numpy as jnp
from jax import lax
from jax.experimental import pallas as pl
from jax.experimental.pallas import tpu as pltpu

_LANE = 128
_SUB = 8
_HEADROOM = 1.5
_MAX_BLOCK_ROWS = 8192


def _hybrid_mlp_kernel(ft_ref, w1_ref, b1_ref, w2_ref, b2_ref, w3_ref, b3_ref,
                       out_ref):
    """Fused Linear+ReLU -> Linear+ReLU -> Linear over one batch tile.

    MXU operands are in w1_ref.dtype (bf16 by default, f32 accumulation);
    bias-add / ReLU run in b1_ref.dtype (f32 on v5e, bf16 on v6e/v7x).

    NOTE on the ragged last batch tile: the out-of-bounds rows of the ft block
    contain undefined VMEM data.  That is fine because every op below is
    row-independent and the padded output rows are dropped by the masked
    writeback -- do NOT add any cross-row reduction to this kernel.
    """
    mm = w1_ref.dtype            # MXU operand dtype
    ew = b1_ref.dtype            # elementwise (bias + ReLU) dtype

    x = ft_ref[...].astype(mm)                                       # [tb, 21]

    h1 = jnp.dot(x, w1_ref[...], preferred_element_type=jnp.float32)
    h1 = jnp.maximum(h1.astype(ew) + b1_ref[...], 0).astype(mm)      # [tb, 128]

    h2 = jnp.dot(h1, w2_ref[...], preferred_element_type=jnp.float32)
    h2 = jnp.maximum(h2.astype(ew) + b2_ref[...], 0).astype(mm)      # [tb, 64]

    # Final layer directly in [tb, out] form: with out=2 the masked store is
    # only ~tb/8 vst.msk and we avoid both a wrapper-side HBM transpose pass
    # and an in-kernel XLU transpose of h2 competing with MXU pushes.
    y = jnp.dot(h2, w3_ref[...], preferred_element_type=jnp.float32)
    out_ref[...] = (y + b3_ref[...].astype(jnp.float32)).astype(out_ref.dtype)


@functools.lru_cache(maxsize=1)
def _chip_info():
    """Best-effort TPU generation detection (perf-only; safe fallbacks)."""
    kind = ""
    try:
        kind = jax.devices()[0].device_kind.lower()
    except Exception:
        pass
    is_v7 = "v7" in kind
    bf16_vpu = ("v6" in kind) or is_v7        # v5e and older have no bf16 VPU
    vmem = None
    try:
        vmem = int(pltpu.get_tpu_info().vmem_capacity_bytes)
    except Exception:
        pass
    if not vmem or vmem <= 0:
        vmem = (64 if is_v7 else 128) * 1024 * 1024
    # Never hand the compiler the whole physical VMEM: leave room for internal
    # scratch (especially on v7x where 64 MiB is the entire per-TC budget).
    vmem_cap = min(vmem, (48 if is_v7 else 100) * 1024 * 1024)
    return {"is_v7": is_v7, "bf16_vpu": bf16_vpu, "vmem_cap": vmem_cap}


def _pad_cols(c, itemsize):
    return (-(-c // _LANE) * _LANE) * itemsize


def _pad2(r, c, itemsize):
    return (-(-r // _SUB) * _SUB) * (-(-c // _LANE) * _LANE) * itemsize


def _per_row_bytes(in_f, h1, h2, out_f, mm_isz, ft_isz):
    """Per-batch-row VMEM footprint (lane-padded)."""
    # Double-buffered streamed tiles (ft in, out) ...
    stream = 2 * (_pad_cols(in_f, ft_isz) + _pad_cols(out_f, 4))
    # ... plus live in-kernel intermediates (f32 matmul results + mm-dtype copies).
    live = (_pad_cols(h1, 4) + _pad_cols(h2, 4) + _pad_cols(out_f, 4)
            + _pad_cols(in_f, mm_isz) + _pad_cols(h1, mm_isz)
            + _pad_cols(h2, mm_isz))
    return stream + live


def _weight_bytes(in_f, h1, h2, out_f, mm_isz, ew_isz):
    # Pallas double-buffers the replicated weight/bias blocks too; they total
    # ~0.1 MiB so no pipeline_mode override is worth the complexity.
    return 2 * (_pad2(in_f, h1, mm_isz) + _pad2(1, h1, ew_isz)
                + _pad2(h1, h2, mm_isz) + _pad2(1, h2, ew_isz)
                + _pad2(h2, out_f, mm_isz) + _pad2(1, out_f, 4))


def _pick_block_b(batch, requested, *, row_bytes, weight_bytes, vmem_cap,
                  two_cores):
    """Batch tile: largest 128-multiple that fits the VMEM budget (<=8192 rows).

    Single-TC chips (v5e/v6e) take the whole batch in one tile whenever it fits
    (the grid is a serial loop there, so splitting only adds per-step overhead).
    v7x splits large batches into an even number of 128-aligned tiles so the
    "parallel" axis shards across its two TensorCores.
    """
    tile_budget = int(vmem_cap / _HEADROOM) - weight_bytes
    cap = max(_LANE, min(_MAX_BLOCK_ROWS,
                         (tile_budget // row_bytes) // _LANE * _LANE))
    if requested is not None:
        bb = min(int(requested), batch)
    else:
        bb = min(cap, batch)
        if two_cores and batch >= 2048:
            n_steps = -(-batch // cap)
            n_steps = max(2, n_steps + (n_steps % 2))   # even step count
            per_step = -(-batch // n_steps)
            bb = min(bb, -(-per_step // _LANE) * _LANE)
    if bb < batch:
        # Sub-batch tiles are 128-row aligned (covers the sublane-8 constraint
        # and keeps the ragged tail confined to the last tile).
        bb = max(_LANE, (bb // _LANE) * _LANE)
        if bb >= batch:
            bb = batch
    return bb


def _vmem_limit_bytes(bb, row_bytes, weight_bytes, vmem_cap):
    need = int(_HEADROOM * (bb * row_bytes + weight_bytes))
    return int(min(vmem_cap, max(32 * 1024 * 1024, need)))


def hybrid_model_forward(seq, ft, params, *, block_b=None,
                         matmul_dtype=jnp.bfloat16):
    """Hybrid_model.forward(seq, ft). `seq` is unused (matches the reference)."""
    del seq  # unused by the PyTorch forward()
    info = _chip_info()

    w1, w2, w3 = params["w1"], params["w2"], params["w3"]
    b1 = params["b1"].reshape(1, -1)
    b2 = params["b2"].reshape(1, -1)
    b3 = params["b3"].reshape(1, -1)

    B, F = ft.shape
    H1, H2, out_size = w1.shape[1], w2.shape[1], w3.shape[1]

    mm = jnp.dtype(matmul_dtype)
    # Elementwise (bias + ReLU) dtype: bf16 on bf16-VPU chips when the MXU path
    # is already bf16; f32 otherwise (v5e has no bf16 VPU, and the f32 MXU path
    # keeps exact-precision semantics end to end).
    if info["bf16_vpu"] and mm == jnp.dtype(jnp.bfloat16):
        ew = jnp.dtype(jnp.bfloat16)
    else:
        ew = jnp.dtype(jnp.float32)

    w1m, w2m, w3m = w1.astype(mm), w2.astype(mm), w3.astype(mm)
    b1e, b2e = b1.astype(ew), b2.astype(ew)
    b3f = b3.astype(jnp.float32)

    row_bytes = _per_row_bytes(F, H1, H2, out_size, mm.itemsize,
                               ft.dtype.itemsize)
    weight_bytes = _weight_bytes(F, H1, H2, out_size, mm.itemsize, ew.itemsize)
    bb = _pick_block_b(B, block_b, row_bytes=row_bytes,
                       weight_bytes=weight_bytes, vmem_cap=info["vmem_cap"],
                       two_cores=info["is_v7"])
    grid = (pl.cdiv(B, bb),)

    rep = lambda arr: pl.BlockSpec(arr.shape, lambda i: (0, 0))

    out = pl.pallas_call(
        _hybrid_mlp_kernel,
        out_shape=jax.ShapeDtypeStruct((B, out_size), jnp.float32),
        grid_spec=pltpu.PrefetchScalarGridSpec(
            num_scalar_prefetch=0,
            grid=grid,
            in_specs=[
                pl.BlockSpec((bb, F), lambda i: (i, 0)),      # ft batch tile
                rep(w1m), rep(b1e), rep(w2m), rep(b2e), rep(w3m), rep(b3f),
            ],
            out_specs=pl.BlockSpec((bb, out_size), lambda i: (i, 0)),
        ),
        compiler_params=pltpu.CompilerParams(
            dimension_semantics=("parallel",),
            vmem_limit_bytes=_vmem_limit_bytes(bb, row_bytes, weight_bytes,
                                               info["vmem_cap"]),
        ),
    )(ft, w1m, b1e, w2m, b2e, w3m, b3f)
    return out


def init_params(key, output_size=2):
    """Deterministic synthetic params matching nn.Linear shapes (stored as [in, out])."""
    k1, k2, k3, k4, k5, k6 = jax.random.split(key, 6)
    scale = 0.1
    return {
        "w1": scale * jax.random.normal(k1, (21, 128), jnp.float32),
        "b1": scale * jax.random.normal(k2, (1, 128), jnp.float32),
        "w2": scale * jax.random.normal(k3, (128, 64), jnp.float32),
        "b2": scale * jax.random.normal(k4, (1, 64), jnp.float32),
        "w3": scale * jax.random.normal(k5, (64, output_size), jnp.float32),
        "b3": scale * jax.random.normal(k6, (1, output_size), jnp.float32),
    }


def _reference_forward(ft, params):
    hp = lax.Precision.HIGHEST
    x = jnp.maximum(jnp.dot(ft, params["w1"], precision=hp) + params["b1"], 0.0)
    x = jnp.maximum(jnp.dot(x, params["w2"], precision=hp) + params["b2"], 0.0)
    return jnp.dot(x, params["w3"], precision=hp) + params["b3"]


if __name__ == "__main__":
    key = jax.random.PRNGKey(0)
    kp, kft, kseq, kft2 = jax.random.split(key, 4)

    params = init_params(kp, output_size=2)

    # Small primary case (single tile covers the whole batch).
    batch = 8
    ft = jax.random.normal(kft, (batch, 21), jnp.float32)     # 21 handcrafted features
    seq = jax.random.normal(kseq, (batch, 16), jnp.float32)   # unused by forward()

    out = jax.block_until_ready(hybrid_model_forward(seq, ft, params))
    ref = _reference_forward(ft, params)
    assert out.shape == (batch, 2), out.shape
    assert jnp.allclose(out, ref, atol=2e-2, rtol=2e-2), "bf16 kernel mismatch (B=8)"

    # Multi-step pipelined grid + ragged last tile (forced small tile so the
    # grid has 3 steps: 128 + 128 + 44 rows).
    batch2 = 300
    ft2 = jax.random.normal(kft2, (batch2, 21), jnp.float32)
    out2 = jax.block_until_ready(
        hybrid_model_forward(None, ft2, params, block_b=128))
    ref2 = _reference_forward(ft2, params)
    assert out2.shape == (batch2, 2), out2.shape
    assert jnp.allclose(out2, ref2, atol=2e-2, rtol=2e-2), "bf16 kernel mismatch (B=300)"

    # Full-f32 MXU-operand variant (exact-precision path, single full-batch tile).
    out3 = jax.block_until_ready(
        hybrid_model_forward(None, ft2, params, matmul_dtype=jnp.float32))
    assert jnp.allclose(out3, ref2, atol=5e-3, rtol=5e-3), "f32 kernel mismatch"

    print("KERNEL_OK")
</pallas_src>

<mosaic_0001>
module attributes {stable_mosaic.version = 11 : i64} {
  func.func @_hybrid_mlp_kernel(%arg0: i32, %arg1: memref<8x21xf32, #tpu.memory_space<vmem>>, %arg2: memref<21x128xbf16, #tpu.memory_space<vmem>>, %arg3: memref<1x128xf32, #tpu.memory_space<vmem>>, %arg4: memref<128x64xbf16, #tpu.memory_space<vmem>>, %arg5: memref<1x64xf32, #tpu.memory_space<vmem>>, %arg6: memref<64x2xbf16, #tpu.memory_space<vmem>>, %arg7: memref<1x2xf32, #tpu.memory_space<vmem>>, %arg8: memref<8x2xf32, #tpu.memory_space<vmem>>) attributes {dimension_semantics = [#tpu.dimension_semantics<parallel>], iteration_bounds = array<i64: 1>, scalar_prefetch = 0 : i64, scratch_operands = 0 : i64, tpu.core_type = #tpu.core_type<tc>, window_params = [{transform_indices = @transform_0, window_bounds = array<i64: 8, 21>}, {pipeline_mode = #tpu.pipeline_mode<synchronous>, transform_indices = @transform_1, window_bounds = array<i64: 21, 128>}, {pipeline_mode = #tpu.pipeline_mode<synchronous>, transform_indices = @transform_2, window_bounds = array<i64: 1, 128>}, {pipeline_mode = #tpu.pipeline_mode<synchronous>, transform_indices = @transform_3, window_bounds = array<i64: 128, 64>}, {pipeline_mode = #tpu.pipeline_mode<synchronous>, transform_indices = @transform_4, window_bounds = array<i64: 1, 64>}, {pipeline_mode = #tpu.pipeline_mode<synchronous>, transform_indices = @transform_5, window_bounds = array<i64: 64, 2>}, {pipeline_mode = #tpu.pipeline_mode<synchronous>, transform_indices = @transform_6, window_bounds = array<i64: 1, 2>}, {transform_indices = @transform_7, window_bounds = array<i64: 8, 2>}]} {
    %c0 = arith.constant 0 : index
    %c0_0 = arith.constant 0 : index
    %0 = vector.load %arg1[%c0, %c0_0] : memref<8x21xf32, #tpu.memory_space<vmem>>, vector<8x21xf32>
    %1 = arith.truncf %0 : vector<8x21xf32> to vector<8x21xbf16>
    %c0_1 = arith.constant 0 : index
    %c0_2 = arith.constant 0 : index
    %2 = vector.load %arg2[%c0_1, %c0_2] : memref<21x128xbf16, #tpu.memory_space<vmem>>, vector<21x128xbf16>
    %cst = arith.constant dense<0.000000e+00> : vector<8x128xf32>
    %3 = tpu.matmul %1, %2, %cst {dimension_numbers = #tpu.dot_dimension_numbers<[1], [0], [0], [1], [0, 0, 1, 1], [], []>} : vector<8x21xbf16>, vector<21x128xbf16>, vector<8x128xf32> -> vector<8x128xf32>
    %c0_3 = arith.constant 0 : index
    %c0_4 = arith.constant 0 : index
    %4 = vector.load %arg3[%c0_3, %c0_4] : memref<1x128xf32, #tpu.memory_space<vmem>>, vector<1x128xf32>
    %5 = vector.broadcast %4 : vector<1x128xf32> to vector<8x128xf32>
    %6 = arith.addf %3, %5 : vector<8x128xf32>
    %cst_5 = arith.constant 0.000000e+00 : f32
    %7 = vector.broadcast %cst_5 : f32 to vector<8x128xf32>
    %8 = arith.maximumf %6, %7 : vector<8x128xf32>
    %9 = arith.truncf %8 : vector<8x128xf32> to vector<8x128xbf16>
    %c0_6 = arith.constant 0 : index
    %c0_7 = arith.constant 0 : index
    %10 = vector.load %arg4[%c0_6, %c0_7] : memref<128x64xbf16, #tpu.memory_space<vmem>>, vector<128x64xbf16>
    %cst_8 = arith.constant dense<0.000000e+00> : vector<8x64xf32>
    %11 = tpu.matmul %9, %10, %cst_8 {dimension_numbers = #tpu.dot_dimension_numbers<[1], [0], [0], [1], [0, 0, 1, 1], [], []>} : vector<8x128xbf16>, vector<128x64xbf16>, vector<8x64xf32> -> vector<8x64xf32>
    %c0_9 = arith.constant 0 : index
    %c0_10 = arith.constant 0 : index
    %12 = vector.load %arg5[%c0_9, %c0_10] : memref<1x64xf32, #tpu.memory_space<vmem>>, vector<1x64xf32>
    %13 = vector.broadcast %12 : vector<1x64xf32> to vector<8x64xf32>
    %14 = arith.addf %11, %13 : vector<8x64xf32>
    %cst_11 = arith.constant 0.000000e+00 : f32
    %15 = vector.broadcast %cst_11 : f32 to vector<8x64xf32>
    %16 = arith.maximumf %14, %15 : vector<8x64xf32>
    %17 = arith.truncf %16 : vector<8x64xf32> to vector<8x64xbf16>
    %c0_12 = arith.constant 0 : index
    %c0_13 = arith.constant 0 : index
    %18 = vector.load %arg6[%c0_12, %c0_13] : memref<64x2xbf16, #tpu.memory_space<vmem>>, vector<64x2xbf16>
    %cst_14 = arith.constant dense<0.000000e+00> : vector<8x2xf32>
    %19 = tpu.matmul %17, %18, %cst_14 {dimension_numbers = #tpu.dot_dimension_numbers<[1], [0], [0], [1], [0, 0, 1, 1], [], []>} : vector<8x64xbf16>, vector<64x2xbf16>, vector<8x2xf32> -> vector<8x2xf32>
    %c0_15 = arith.constant 0 : index
    %c0_16 = arith.constant 0 : index
    %20 = vector.load %arg7[%c0_15, %c0_16] : memref<1x2xf32, #tpu.memory_space<vmem>>, vector<1x2xf32>
    %21 = vector.broadcast %20 : vector<1x2xf32> to vector<8x2xf32>
    %22 = arith.addf %19, %21 : vector<8x2xf32>
    %c0_17 = arith.constant 0 : index
    %c0_18 = arith.constant 0 : index
    %23 = vector.load %arg8[%c0_17, %c0_18] : memref<8x2xf32, #tpu.memory_space<vmem>>, vector<8x2xf32>
    tpu.vector_store %arg8[%c0_17, %c0_18], %22 {strides = array<i32>} : memref<8x2xf32, #tpu.memory_space<vmem>>, vector<8x2xf32>,
    return
  }
  func.func @transform_0(%arg0: i32) -> (i32, i32) {
    %c0_i32 = arith.constant 0 : i32
    %c0_i32_0 = arith.constant 0 : i32
    return %arg0, %c0_i32 : i32, i32
  }
  func.func @transform_1(%arg0: i32) -> (i32, i32) {
    %c0_i32 = arith.constant 0 : i32
    %c0_i32_0 = arith.constant 0 : i32
    %c0_i32_1 = arith.constant 0 : i32
    return %c0_i32, %c0_i32_0 : i32, i32
  }
  func.func @transform_2(%arg0: i32) -> (i32, i32) {
    %c0_i32 = arith.constant 0 : i32
    %c0_i32_0 = arith.constant 0 : i32
    %c0_i32_1 = arith.constant 0 : i32
    return %c0_i32, %c0_i32_0 : i32, i32
  }
  func.func @transform_3(%arg0: i32) -> (i32, i32) {
    %c0_i32 = arith.constant 0 : i32
    %c0_i32_0 = arith.constant 0 : i32
    %c0_i32_1 = arith.constant 0 : i32
    return %c0_i32, %c0_i32_0 : i32, i32
  }
  func.func @transform_4(%arg0: i32) -> (i32, i32) {
    %c0_i32 = arith.constant 0 : i32
    %c0_i32_0 = arith.constant 0 : i32
    %c0_i32_1 = arith.constant 0 : i32
    return %c0_i32, %c0_i32_0 : i32, i32
  }
  func.func @transform_5(%arg0: i32) -> (i32, i32) {
    %c0_i32 = arith.constant 0 : i32
    %c0_i32_0 = arith.constant 0 : i32
    %c0_i32_1 = arith.constant 0 : i32
    return %c0_i32, %c0_i32_0 : i32, i32
  }
  func.func @transform_6(%arg0: i32) -> (i32, i32) {
    %c0_i32 = arith.constant 0 : i32
    %c0_i32_0 = arith.constant 0 : i32
    %c0_i32_1 = arith.constant 0 : i32
    return %c0_i32, %c0_i32_0 : i32, i32
  }
  func.func @transform_7(%arg0: i32) -> (i32, i32) {
    %c0_i32 = arith.constant 0 : i32
    %c0_i32_0 = arith.constant 0 : i32
    return %arg0, %c0_i32 : i32, i32
  }
}

</mosaic_0001>

<bundles_post_ra>
// kernel: tpu_custom_call.1
= control target key start
LH: loop header
LB: loop body
LE: loop exit
PB: predicated region body
PF: predicated region fallthrough
CT: control target
= control target key end

     0   :  { %vm52_vm0 = vcmask 1041408   ;;  %vm53_vm1 = vcmask 1042432   ;;  %v396_v0 = vmov 0.0   ;;  %v397_v2 = vmov 65535   ;;  %s496_s1 = inlined_call_operand.vmem [shape: bf16[21,128], index: 1, kind: input, shape index: {}]   ;;  %s497_s0 = inlined_call_operand.vmem [shape: f32[8,21], index: 0, kind: input, shape index: {}]   ;;  %s498_s3 = inlined_call_operand.vmem [shape: bf16[128,64], index: 3, kind: input, shape index: {}]   ;;  %s499_s5 = inlined_call_operand.vmem [shape: bf16[64,2], index: 5, kind: input, shape index: {}]   ;;  %s500_s2 = inlined_call_operand.vmem [shape: f32[1,128], index: 2, kind: input, shape index: {}]   ;;  %s501_s4 = inlined_call_operand.vmem [shape: f32[1,64], index: 4, kind: input, shape index: {}]   ;;  %s502_s6 = inlined_call_operand.vmem [shape: f32[1,2], index: 6, kind: input, shape index: {}]   ;;  %s503_s7 = inlined_call_operand.vmem [shape: f32[8,2], index: 7, kind: output, shape index: {}]  }
   0x1   :  { %339 = vmatprep.subr.bf16.mxu0 %v396_v0  ;;  %v382_v1 = vld [vmem:[%s496_s1] sm:$0xff]   ;;  %v54_v3 = vsel %vm52_vm0, 4294967295, %v397_v2  ;;  %347 = vmatprep.subr.bf16.mxu1 %v396_v0  ;;  %v383_v4 = vld [vmem:[%s496_s1 + $0x8] ss:$0 sps:$4 sm:$0x77]   ;;  %vm398_vm2 = vmmov 0  }
   0x2   :  { %v55_v5 = vsel %vm53_vm1, %v54_v3, 0  ;;  %340 = vmatpush3.bf16.msra.mxu0 %v382_v1  ;;  %v27_v6 = vld [vmem:[%s497_s0] sm:$0xff]  ;;  %343 = vmatprep.mubr.msk.bf16.mxu0 %vm398_vm2, %v396_v0  ;;  %v385_v9 = vld [vmem:[%s498_s3 + $0x8] sm:$0xff]   ;;  %vm48_vm3 = vcmask 171008   ;;  %v386_v11 = vld [vmem:[%s498_s3 + $0x10] sm:$0xff]   ;;  %vm253_vm4 = vcmask 523264  }
   0x3   :  { %v384_v7 = vld [vmem:[%s498_s3] sm:$0xff]   ;;  %341 = vmatprep.subr.bf16.mxu0 %v396_v0  ;;  %v57_v8 = vand.u32 %v383_v4, %v55_v5  ;;  %363 = vmatprep.mubr.msk.bf16.mxu1 %vm398_vm2, %v396_v0  ;;  %v28_v10 = vpack.c.bf16 %v27_v6, %v27_v6  ;;  %v387_v12 = vld [vmem:[%s498_s3 + $0x18] sm:$0xff]   ;;  %v389_v14 = vld [vmem:[%s498_s3 + $0x28] sm:$0xff]   ;;  %vm297_vm5 = vcmask 15360  }
   0x4   :  { %348 = vmatpush3.bf16.msra.mxu1 %v384_v7  ;;  %v388_v13 = vld [vmem:[%s498_s3 + $0x20] sm:$0xff]   ;;  %v390_v15 = vld [vmem:[%s498_s3 + $0x30] sm:$0xff]   ;;  %v391_v16 = vld [vmem:[%s498_s3 + $0x38] sm:$0xff]  }
   0x5   :  { %349 = vmatprep.subr.bf16.mxu1 %v396_v0  ;;  %v392_v17 = vld [vmem:[%s499_s5] sm:$0xff]   ;;  %v393_v18 = vld [vmem:[%s499_s5 + $0x8] sm:$0xff]   ;;  %v394_v27 = vld [vmem:[%s499_s5 + $0x10] sm:$0xff]  }
   0x6   :  { %342 = vmatpush3.bf16.msra.mxu0 %v57_v8  ;;  %v303_v19 = vld [vmem:[%s500_s2] ss:$0 sm:$0xff]  ;;  %v395_v28 = vld [vmem:[%s499_s5 + $0x18] sm:$0xff]  }
   0x7   :  { %367 = vmatprep.subr.bf16.mxu0 %v396_v0  ;;  %v307_v29 = vld [vmem:[%s501_s4] ss:$0 sm:$0xff] }
   0x8   :  { %350 = vmatpush3.bf16.msra.mxu1 %v385_v9  ;;  %v316_v37 = vld [vmem:[%s502_s6] ss:$0 sm:$0xff] }
   0x9   :  { %344 = vmatmul.mubr.msk.bf16.vlgmr.msra.gmra.mrb[0].mxu0 %vm48_vm3, %v28_v10  ;;  %351 = vmatprep.subr.bf16.mxu1 %v396_v0 }
   0xa   :  { %375 = vmatprep.mubr.msk.bf16.mxu0 %vm398_vm2, %v396_v0  ;;  %368 = vmatpush3.bf16.msra.mxu0 %v392_v17 }
   0xb   :  { %369 = vmatprep.subr.bf16.mxu0 %v396_v0 }
   0xc   :  { %352 = vmatpush3.bf16.msra.mxu1 %v386_v11 }
   0xd   :  { %353 = vmatprep.subr.bf16.mxu1 %v396_v0 }
   0xe   :  { %370 = vmatpush3.bf16.msra.mxu0 %v393_v18 }
   0xf   :  { %371 = vmatprep.subr.bf16.mxu0 %v396_v0 }
  0x10   :  { %354 = vmatpush3.bf16.msra.mxu1 %v387_v12 }
  0x11   :  { %355 = vmatprep.subr.bf16.mxu1 %v396_v0 }
  0x12   :  { %372 = vmatpush3.bf16.msra.mxu0 %v394_v27 }
  0x13   :  { %373 = vmatprep.subr.bf16.mxu0 %v396_v0 }
  0x14   :  { %356 = vmatpush3.bf16.msra.mxu1 %v388_v13 }
  0x15   :  { %357 = vmatprep.subr.bf16.mxu1 %v396_v0 }
  0x16   :  { %374 = vmatpush3.bf16.msra.mxu0 %v395_v28 }
  0x18   :  { %358 = vmatpush3.bf16.msra.mxu1 %v389_v14 }
  0x19   :  { %359 = vmatprep.subr.bf16.mxu1 %v396_v0 }
  0x1c   :  { %360 = vmatpush3.bf16.msra.mxu1 %v390_v15 }
  0x1d   :  { %361 = vmatprep.subr.bf16.mxu1 %v396_v0 }
  0x20   :  { %362 = vmatpush3.bf16.msra.mxu1 %v391_v16 }
  0xdc   :  { %v93_v20 = vpop.f32.mrb[0].mxu0 }
  0xdd   :  { %v94_v21 = vadd.f32 %v303_v19, %v93_v20  ;;  %v345_v22 = vpop.f32.mrb[1].mxu0 }
  0xde   :  { %v96_v23 = vpop.f32.mrb[2].mxu0 }
  0xdf   :  { %v99_v24 = vmax.f32 %v94_v21, 0.0  ;;  %v346_v25 = vpop.f32.mrb[3].mxu0 }
  0xe1   :  { %v100_v26 = vpack.c.bf16 %v99_v24, %v99_v24 }
  0xe3   :  { %364 = vmatmul.mubr.bf16.vlgmr.msra.gmra.mrb[0].mxu1 %v100_v26 }
 0x1b6   :  { %v206_v30 = vpop.f32.mrb[0].mxu1 }
 0x1b7   :  { %v207_v31 = vadd.f32 %v307_v29, %v206_v30  ;;  %v365_v32 = vpop.f32.mrb[1].mxu1 }
 0x1b8   :  { %v209_v33 = vpop.f32.mrb[2].mxu1 }
 0x1b9   :  { %v212_v34 = vmax.f32 %v207_v31, 0.0  ;;  %v366_v35 = vpop.f32.mrb[3].mxu1 }
 0x1bb   :  { %v213_v36 = vpack.c.bf16 %v212_v34, %v212_v34 }
 0x1bd   :  { %376 = vmatmul.mubr.msk.bf16.vlgmr.msra.gmra.mrb[4].mxu0 %vm253_vm4, %v213_v36 }
 0x290   :  { %v291_v38 = vpop.f32.mrb[4].mxu0 }
 0x291   :  { %v292_v39 = vadd.f32 %v316_v37, %v291_v38  ;;  %v377_v40 = vpop.f32.mrb[5].mxu0 }
 0x292   :  { %v294_v41 = vpop.f32.mrb[6].mxu0 }
 0x293   :  { %298 = vst.msk [vmem:[%s503_s7] sm:$0xff] %vm297_vm5, %v292_v39  ;;  %v378_v42 = vpop.f32.mrb[7].mxu0 }

</bundles_post_ra>
